<compile_context>
chip_gen: v7x
topology: tpu7x:2x2x1
jax: 0.10.0
libtpu: 0.0.40
codegen_flags: <defaults>
</compile_context>

<pallas_src>
import jax
import jax.numpy as jnp
from jax.experimental import pallas as pl
from jax.experimental.pallas import tpu as pltpu

BN_EPS = 1e-5
_LANES = 128
_TS = 512  # sublane tile: 512 * 128 = 65536 pixels/step (~4.7 MB HBM traffic)


def _bnf_kernel(w1_ref, b1_ref, w2_ref, b2_ref, x_ref, y_ref,
                o_sub_ref, o_rsub_ref, o_add_ref):
    # x_ref / y_ref : (Cin, TS, 128) f32 VMEM tiles (dense (8,128) vregs)
    # w*_ref        : (Cout, Cin) f32 in SMEM   (BN scale pre-folded into w1/b1)
    # b*_ref        : (Cout,)     f32 in SMEM
    # o_*_ref       : (Cout, TS, 128) f32 VMEM tiles
    cin = x_ref.shape[0]
    cout = o_sub_ref.shape[0]
    for co in range(cout):
        # 1x1 conv = scalar (SMEM) x dense tile FMAs, fully unrolled (3 per conv).
        xb = x_ref[0] * w1_ref[co, 0]
        yc = y_ref[0] * w2_ref[co, 0]
        for c in range(1, cin):
            xb = xb + x_ref[c] * w1_ref[co, c]
            yc = yc + y_ref[c] * w2_ref[co, c]
        xb = xb + b1_ref[co]
        yc = yc + b2_ref[co]
        o_sub_ref[co] = xb - yc
        o_rsub_ref[co] = yc - xb
        o_add_ref[co] = xb + yc


def bnf_net(x_nchw, y_nchw, w1, b1, w2, b2):
    """x_nchw, y_nchw: (N, 3, H, W) f32; w*: (4, 3, 1, 1); b*: (4,)."""
    N, Cin, H, W = x_nchw.shape
    Cout = w1.shape[0]
    HW = H * W
    HW_pad = pl.cdiv(HW, _LANES) * _LANES
    S = HW_pad // _LANES

    # Pure reshape (channel-major preserved); pad HW to a 128 multiple only if
    # needed.  Padded lanes are garbage-in / masked-out, kernel is elementwise.
    x3 = x_nchw.reshape(N, Cin, HW)
    y3 = y_nchw.reshape(N, Cin, HW)
    if HW_pad != HW:
        pad = ((0, 0), (0, 0), (0, HW_pad - HW))
        x3 = jnp.pad(x3, pad)
        y3 = jnp.pad(y3, pad)
    x4 = x3.reshape(N, Cin, S, _LANES)
    y4 = y3.reshape(N, Cin, S, _LANES)

    # Fold BN (eval mode, mean=0, var=1, no affine) into conv1 weights/bias.
    bn_scale = 1.0 / jnp.sqrt(jnp.float32(1.0 + BN_EPS))
    w1_m = w1.reshape(Cout, Cin) * bn_scale
    b1_m = (b1 * bn_scale).reshape(Cout)
    w2_m = w2.reshape(Cout, Cin)
    b2_m = b2.reshape(Cout)

    # Tile: TS sublanes x 128 lanes.  TS multiple of 8 (or == full S extent).
    TS = S if S <= _TS else _TS
    grid = (N, pl.cdiv(S, TS))

    out_sd = jax.ShapeDtypeStruct((N, Cout, S, _LANES), jnp.float32)
    smem_spec = pl.BlockSpec(memory_space=pltpu.MemorySpace.SMEM)
    img_spec = pl.BlockSpec((None, Cin, TS, _LANES), lambda n, t: (n, 0, t, 0))
    out_spec = pl.BlockSpec((None, Cout, TS, _LANES), lambda n, t: (n, 0, t, 0))

    # Roofline hint: ~60 flops/pixel, ~72 bytes/pixel (strongly HBM-bound).
    cost = pl.CostEstimate(flops=60 * N * HW_pad, transcendentals=0,
                           bytes_accessed=72 * N * HW_pad)

    o_sub, o_rsub, o_add = pl.pallas_call(
        _bnf_kernel,
        out_shape=(out_sd, out_sd, out_sd),
        grid=grid,
        in_specs=[smem_spec, smem_spec, smem_spec, smem_spec,
                  img_spec, img_spec],
        out_specs=(out_spec, out_spec, out_spec),
        compiler_params=pltpu.CompilerParams(
            dimension_semantics=("parallel", "parallel")),
        cost_estimate=cost,
    )(w1_m, b1_m, w2_m, b2_m, x4, y4)

    def back(o):
        o = o.reshape(N, Cout, HW_pad)
        if HW_pad != HW:
            o = o[:, :, :HW]
        return o.reshape(N, Cout, H, W)

    return back(o_sub), back(o_rsub), back(o_add)


def _reference(x, y, w1, b1, w2, b2):
    Cout, Cin = w1.shape[0], w1.shape[1]
    xc = jnp.einsum("nchw,oc->nohw", x, w1.reshape(Cout, Cin)) \
         + b1[None, :, None, None]
    xb = xc / jnp.sqrt(1.0 + BN_EPS)
    yc = jnp.einsum("nchw,oc->nohw", y, w2.reshape(Cout, Cin)) \
         + b2[None, :, None, None]
    return xb - yc, yc - xb, xb + yc


if __name__ == "__main__":
    key = jax.random.PRNGKey(0)
    kx, ky, kw1, kb1, kw2, kb2 = jax.random.split(key, 6)

    Cin, Cout = 3, 4
    # Deterministic parameters (shapes match torch.nn.Conv2d(3, 4, 1, 1)).
    w1 = jax.random.normal(kw1, (Cout, Cin, 1, 1), dtype=jnp.float32) * 0.1
    b1 = jax.random.normal(kb1, (Cout,), dtype=jnp.float32) * 0.1
    w2 = jax.random.normal(kw2, (Cout, Cin, 1, 1), dtype=jnp.float32) * 0.1
    b2 = jax.random.normal(kb2, (Cout,), dtype=jnp.float32) * 0.1

    # Case 1: HW divisible by 128 (pure-reshape fast path).
    # Case 2: HW NOT divisible by 128 (exercises the cdiv/padding path).
    for (N, H, W) in [(2, 16, 16), (1, 10, 13)]:
        kx, ky = jax.random.split(jax.random.fold_in(key, H * W), 2)
        x = jax.random.normal(kx, (N, Cin, H, W), dtype=jnp.float32)
        y = jax.random.normal(ky, (N, Cin, H, W), dtype=jnp.float32)

        outs = bnf_net(x, y, w1, b1, w2, b2)
        jax.block_until_ready(outs)

        refs = _reference(x, y, w1, b1, w2, b2)
        for o, r in zip(outs, refs):
            assert o.shape == r.shape
            assert jnp.allclose(o, r, atol=1e-5, rtol=1e-5)

    print("KERNEL_OK")
</pallas_src>

<mosaic_0001>
module attributes {stable_mosaic.version = 11 : i64} {
  func.func @_bnf_kernel(%arg0: i32, %arg1: i32, %arg2: memref<4x3xf32, #tpu.memory_space<smem>>, %arg3: memref<4xf32, #tpu.memory_space<smem>>, %arg4: memref<4x3xf32, #tpu.memory_space<smem>>, %arg5: memref<4xf32, #tpu.memory_space<smem>>, %arg6: memref<1x3x2x128xf32, #tpu.memory_space<vmem>>, %arg7: memref<1x3x2x128xf32, #tpu.memory_space<vmem>>, %arg8: memref<1x4x2x128xf32, #tpu.memory_space<vmem>>, %arg9: memref<1x4x2x128xf32, #tpu.memory_space<vmem>>, %arg10: memref<1x4x2x128xf32, #tpu.memory_space<vmem>>) attributes {dimension_semantics = [#tpu.dimension_semantics<parallel>, #tpu.dimension_semantics<parallel>], iteration_bounds = array<i64: 2, 1>, scalar_prefetch = 0 : i64, scratch_operands = 0 : i64, tpu.core_type = #tpu.core_type<tc>, window_params = [{transform_indices = @transform_0, window_bounds = array<i64: 4, 3>}, {transform_indices = @transform_1, window_bounds = array<i64: 4>}, {transform_indices = @transform_2, window_bounds = array<i64: 4, 3>}, {transform_indices = @transform_3, window_bounds = array<i64: 4>}, {transform_indices = @transform_4, window_bounds = array<i64: 1, 3, 2, 128>}, {transform_indices = @transform_5, window_bounds = array<i64: 1, 3, 2, 128>}, {transform_indices = @transform_6, window_bounds = array<i64: 1, 4, 2, 128>}, {transform_indices = @transform_7, window_bounds = array<i64: 1, 4, 2, 128>}, {transform_indices = @transform_8, window_bounds = array<i64: 1, 4, 2, 128>}]} {
    %c0 = arith.constant 0 : index
    %c0_0 = arith.constant 0 : index
    %c0_1 = arith.constant 0 : index
    %c0_2 = arith.constant 0 : index
    %0 = vector.load %arg6[%c0, %c0_0, %c0_1, %c0_2] : memref<1x3x2x128xf32, #tpu.memory_space<vmem>>, vector<1x1x2x128xf32>
    %1 = vector.shape_cast %0 : vector<1x1x2x128xf32> to vector<2x128xf32>
    %c0_3 = arith.constant 0 : index
    %c0_4 = arith.constant 0 : index
    %2 = memref.load %arg2[%c0_3, %c0_4] : memref<4x3xf32, #tpu.memory_space<smem>>
    %3 = vector.broadcast %2 : f32 to vector<2x128xf32>
    %4 = arith.mulf %1, %3 : vector<2x128xf32>
    %c0_5 = arith.constant 0 : index
    %c0_6 = arith.constant 0 : index
    %c0_7 = arith.constant 0 : index
    %c0_8 = arith.constant 0 : index
    %5 = vector.load %arg7[%c0_5, %c0_6, %c0_7, %c0_8] : memref<1x3x2x128xf32, #tpu.memory_space<vmem>>, vector<1x1x2x128xf32>
    %6 = vector.shape_cast %5 : vector<1x1x2x128xf32> to vector<2x128xf32>
    %c0_9 = arith.constant 0 : index
    %c0_10 = arith.constant 0 : index
    %7 = memref.load %arg4[%c0_9, %c0_10] : memref<4x3xf32, #tpu.memory_space<smem>>
    %8 = vector.broadcast %7 : f32 to vector<2x128xf32>
    %9 = arith.mulf %6, %8 : vector<2x128xf32>
    %c0_11 = arith.constant 0 : index
    %c1 = arith.constant 1 : index
    %c0_12 = arith.constant 0 : index
    %c0_13 = arith.constant 0 : index
    %10 = vector.load %arg6[%c0_11, %c1, %c0_12, %c0_13] : memref<1x3x2x128xf32, #tpu.memory_space<vmem>>, vector<1x1x2x128xf32>
    %11 = vector.shape_cast %10 : vector<1x1x2x128xf32> to vector<2x128xf32>
    %c0_14 = arith.constant 0 : index
    %c1_15 = arith.constant 1 : index
    %12 = memref.load %arg2[%c0_14, %c1_15] : memref<4x3xf32, #tpu.memory_space<smem>>
    %13 = vector.broadcast %12 : f32 to vector<2x128xf32>
    %14 = arith.mulf %11, %13 : vector<2x128xf32>
    %15 = arith.addf %4, %14 : vector<2x128xf32>
    %c0_16 = arith.constant 0 : index
    %c1_17 = arith.constant 1 : index
    %c0_18 = arith.constant 0 : index
    %c0_19 = arith.constant 0 : index
    %16 = vector.load %arg7[%c0_16, %c1_17, %c0_18, %c0_19] : memref<1x3x2x128xf32, #tpu.memory_space<vmem>>, vector<1x1x2x128xf32>
    %17 = vector.shape_cast %16 : vector<1x1x2x128xf32> to vector<2x128xf32>
    %c0_20 = arith.constant 0 : index
    %c1_21 = arith.constant 1 : index
    %18 = memref.load %arg4[%c0_20, %c1_21] : memref<4x3xf32, #tpu.memory_space<smem>>
    %19 = vector.broadcast %18 : f32 to vector<2x128xf32>
    %20 = arith.mulf %17, %19 : vector<2x128xf32>
    %21 = arith.addf %9, %20 : vector<2x128xf32>
    %c0_22 = arith.constant 0 : index
    %c2 = arith.constant 2 : index
    %c0_23 = arith.constant 0 : index
    %c0_24 = arith.constant 0 : index
    %22 = vector.load %arg6[%c0_22, %c2, %c0_23, %c0_24] : memref<1x3x2x128xf32, #tpu.memory_space<vmem>>, vector<1x1x2x128xf32>
    %23 = vector.shape_cast %22 : vector<1x1x2x128xf32> to vector<2x128xf32>
    %c0_25 = arith.constant 0 : index
    %c2_26 = arith.constant 2 : index
    %24 = memref.load %arg2[%c0_25, %c2_26] : memref<4x3xf32, #tpu.memory_space<smem>>
    %25 = vector.broadcast %24 : f32 to vector<2x128xf32>
    %26 = arith.mulf %23, %25 : vector<2x128xf32>
    %27 = arith.addf %15, %26 : vector<2x128xf32>
    %c0_27 = arith.constant 0 : index
    %c2_28 = arith.constant 2 : index
    %c0_29 = arith.constant 0 : index
    %c0_30 = arith.constant 0 : index
    %28 = vector.load %arg7[%c0_27, %c2_28, %c0_29, %c0_30] : memref<1x3x2x128xf32, #tpu.memory_space<vmem>>, vector<1x1x2x128xf32>
    %29 = vector.shape_cast %28 : vector<1x1x2x128xf32> to vector<2x128xf32>
    %c0_31 = arith.constant 0 : index
    %c2_32 = arith.constant 2 : index
    %30 = memref.load %arg4[%c0_31, %c2_32] : memref<4x3xf32, #tpu.memory_space<smem>>
    %31 = vector.broadcast %30 : f32 to vector<2x128xf32>
    %32 = arith.mulf %29, %31 : vector<2x128xf32>
    %33 = arith.addf %21, %32 : vector<2x128xf32>
    %c0_33 = arith.constant 0 : index
    %34 = memref.load %arg3[%c0_33] : memref<4xf32, #tpu.memory_space<smem>>
    %35 = vector.broadcast %34 : f32 to vector<2x128xf32>
    %36 = arith.addf %27, %35 : vector<2x128xf32>
    %c0_34 = arith.constant 0 : index
    %37 = memref.load %arg5[%c0_34] : memref<4xf32, #tpu.memory_space<smem>>
    %38 = vector.broadcast %37 : f32 to vector<2x128xf32>
    %39 = arith.addf %33, %38 : vector<2x128xf32>
    %40 = arith.subf %36, %39 : vector<2x128xf32>
    %c0_35 = arith.constant 0 : index
    %c0_36 = arith.constant 0 : index
    %c0_37 = arith.constant 0 : index
    %c0_38 = arith.constant 0 : index
    %41 = vector.load %arg8[%c0_35, %c0_36, %c0_37, %c0_38] : memref<1x4x2x128xf32, #tpu.memory_space<vmem>>, vector<1x1x2x128xf32>
    %42 = vector.shape_cast %41 : vector<1x1x2x128xf32> to vector<2x128xf32>
    %43 = vector.shape_cast %40 : vector<2x128xf32> to vector<1x1x2x128xf32>
    tpu.vector_store %arg8[%c0_35, %c0_36, %c0_37, %c0_38], %43 {strides = array<i32>} : memref<1x4x2x128xf32, #tpu.memory_space<vmem>>, vector<1x1x2x128xf32>,
    %44 = arith.subf %39, %36 : vector<2x128xf32>
    %c0_39 = arith.constant 0 : index
    %c0_40 = arith.constant 0 : index
    %c0_41 = arith.constant 0 : index
    %c0_42 = arith.constant 0 : index
    %45 = vector.load %arg9[%c0_39, %c0_40, %c0_41, %c0_42] : memref<1x4x2x128xf32, #tpu.memory_space<vmem>>, vector<1x1x2x128xf32>
    %46 = vector.shape_cast %45 : vector<1x1x2x128xf32> to vector<2x128xf32>
    %47 = vector.shape_cast %44 : vector<2x128xf32> to vector<1x1x2x128xf32>
    tpu.vector_store %arg9[%c0_39, %c0_40, %c0_41, %c0_42], %47 {strides = array<i32>} : memref<1x4x2x128xf32, #tpu.memory_space<vmem>>, vector<1x1x2x128xf32>,
    %48 = arith.addf %36, %39 : vector<2x128xf32>
    %c0_43 = arith.constant 0 : index
    %c0_44 = arith.constant 0 : index
    %c0_45 = arith.constant 0 : index
    %c0_46 = arith.constant 0 : index
    %49 = vector.load %arg10[%c0_43, %c0_44, %c0_45, %c0_46] : memref<1x4x2x128xf32, #tpu.memory_space<vmem>>, vector<1x1x2x128xf32>
    %50 = vector.shape_cast %49 : vector<1x1x2x128xf32> to vector<2x128xf32>
    %51 = vector.shape_cast %48 : vector<2x128xf32> to vector<1x1x2x128xf32>
    tpu.vector_store %arg10[%c0_43, %c0_44, %c0_45, %c0_46], %51 {strides = array<i32>} : memref<1x4x2x128xf32, #tpu.memory_space<vmem>>, vector<1x1x2x128xf32>,
    %c0_47 = arith.constant 0 : index
    %c0_48 = arith.constant 0 : index
    %c0_49 = arith.constant 0 : index
    %c0_50 = arith.constant 0 : index
    %52 = vector.load %arg6[%c0_47, %c0_48, %c0_49, %c0_50] : memref<1x3x2x128xf32, #tpu.memory_space<vmem>>, vector<1x1x2x128xf32>
    %53 = vector.shape_cast %52 : vector<1x1x2x128xf32> to vector<2x128xf32>
    %c1_51 = arith.constant 1 : index
    %c0_52 = arith.constant 0 : index
    %54 = memref.load %arg2[%c1_51, %c0_52] : memref<4x3xf32, #tpu.memory_space<smem>>
    %55 = vector.broadcast %54 : f32 to vector<2x128xf32>
    %56 = arith.mulf %53, %55 : vector<2x128xf32>
    %c0_53 = arith.constant 0 : index
    %c0_54 = arith.constant 0 : index
    %c0_55 = arith.constant 0 : index
    %c0_56 = arith.constant 0 : index
    %57 = vector.load %arg7[%c0_53, %c0_54, %c0_55, %c0_56] : memref<1x3x2x128xf32, #tpu.memory_space<vmem>>, vector<1x1x2x128xf32>
    %58 = vector.shape_cast %57 : vector<1x1x2x128xf32> to vector<2x128xf32>
    %c1_57 = arith.constant 1 : index
    %c0_58 = arith.constant 0 : index
    %59 = memref.load %arg4[%c1_57, %c0_58] : memref<4x3xf32, #tpu.memory_space<smem>>
    %60 = vector.broadcast %59 : f32 to vector<2x128xf32>
    %61 = arith.mulf %58, %60 : vector<2x128xf32>
    %c0_59 = arith.constant 0 : index
    %c1_60 = arith.constant 1 : index
    %c0_61 = arith.constant 0 : index
    %c0_62 = arith.constant 0 : index
    %62 = vector.load %arg6[%c0_59, %c1_60, %c0_61, %c0_62] : memref<1x3x2x128xf32, #tpu.memory_space<vmem>>, vector<1x1x2x128xf32>
    %63 = vector.shape_cast %62 : vector<1x1x2x128xf32> to vector<2x128xf32>
    %c1_63 = arith.constant 1 : index
    %c1_64 = arith.constant 1 : index
    %64 = memref.load %arg2[%c1_63, %c1_64] : memref<4x3xf32, #tpu.memory_space<smem>>
    %65 = vector.broadcast %64 : f32 to vector<2x128xf32>
    %66 = arith.mulf %63, %65 : vector<2x128xf32>
    %67 = arith.addf %56, %66 : vector<2x128xf32>
    %c0_65 = arith.constant 0 : index
    %c1_66 = arith.constant 1 : index
    %c0_67 = arith.constant 0 : index
    %c0_68 = arith.constant 0 : index
    %68 = vector.load %arg7[%c0_65, %c1_66, %c0_67, %c0_68] : memref<1x3x2x128xf32, #tpu.memory_space<vmem>>, vector<1x1x2x128xf32>
    %69 = vector.shape_cast %68 : vector<1x1x2x128xf32> to vector<2x128xf32>
    %c1_69 = arith.constant 1 : index
    %c1_70 = arith.constant 1 : index
    %70 = memref.load %arg4[%c1_69, %c1_70] : memref<4x3xf32, #tpu.memory_space<smem>>
    %71 = vector.broadcast %70 : f32 to vector<2x128xf32>
    %72 = arith.mulf %69, %71 : vector<2x128xf32>
    %73 = arith.addf %61, %72 : vector<2x128xf32>
    %c0_71 = arith.constant 0 : index
    %c2_72 = arith.constant 2 : index
    %c0_73 = arith.constant 0 : index
    %c0_74 = arith.constant 0 : index
    %74 = vector.load %arg6[%c0_71, %c2_72, %c0_73, %c0_74] : memref<1x3x2x128xf32, #tpu.memory_space<vmem>>, vector<1x1x2x128xf32>
    %75 = vector.shape_cast %74 : vector<1x1x2x128xf32> to vector<2x128xf32>
    %c1_75 = arith.constant 1 : index
    %c2_76 = arith.constant 2 : index
    %76 = memref.load %arg2[%c1_75, %c2_76] : memref<4x3xf32, #tpu.memory_space<smem>>
    %77 = vector.broadcast %76 : f32 to vector<2x128xf32>
    %78 = arith.mulf %75, %77 : vector<2x128xf32>
    %79 = arith.addf %67, %78 : vector<2x128xf32>
    %c0_77 = arith.constant 0 : index
    %c2_78 = arith.constant 2 : index
    %c0_79 = arith.constant 0 : index
    %c0_80 = arith.constant 0 : index
    %80 = vector.load %arg7[%c0_77, %c2_78, %c0_79, %c0_80] : memref<1x3x2x128xf32, #tpu.memory_space<vmem>>, vector<1x1x2x128xf32>
    %81 = vector.shape_cast %80 : vector<1x1x2x128xf32> to vector<2x128xf32>
    %c1_81 = arith.constant 1 : index
    %c2_82 = arith.constant 2 : index
    %82 = memref.load %arg4[%c1_81, %c2_82] : memref<4x3xf32, #tpu.memory_space<smem>>
    %83 = vector.broadcast %82 : f32 to vector<2x128xf32>
    %84 = arith.mulf %81, %83 : vector<2x128xf32>
    %85 = arith.addf %73, %84 : vector<2x128xf32>
    %c1_83 = arith.constant 1 : index
    %86 = memref.load %arg3[%c1_83] : memref<4xf32, #tpu.memory_space<smem>>
    %87 = vector.broadcast %86 : f32 to vector<2x128xf32>
    %88 = arith.addf %79, %87 : vector<2x128xf32>
    %c1_84 = arith.constant 1 : index
    %89 = memref.load %arg5[%c1_84] : memref<4xf32, #tpu.memory_space<smem>>
    %90 = vector.broadcast %89 : f32 to vector<2x128xf32>
    %91 = arith.addf %85, %90 : vector<2x128xf32>
    %92 = arith.subf %88, %91 : vector<2x128xf32>
    %c0_85 = arith.constant 0 : index
    %c1_86 = arith.constant 1 : index
    %c0_87 = arith.constant 0 : index
    %c0_88 = arith.constant 0 : index
    %93 = vector.load %arg8[%c0_85, %c1_86, %c0_87, %c0_88] : memref<1x4x2x128xf32, #tpu.memory_space<vmem>>, vector<1x1x2x128xf32>
    %94 = vector.shape_cast %93 : vector<1x1x2x128xf32> to vector<2x128xf32>
    %95 = vector.shape_cast %92 : vector<2x128xf32> to vector<1x1x2x128xf32>
    tpu.vector_store %arg8[%c0_85, %c1_86, %c0_87, %c0_88], %95 {strides = array<i32>} : memref<1x4x2x128xf32, #tpu.memory_space<vmem>>, vector<1x1x2x128xf32>,
    %96 = arith.subf %91, %88 : vector<2x128xf32>
    %c0_89 = arith.constant 0 : index
    %c1_90 = arith.constant 1 : index
    %c0_91 = arith.constant 0 : index
    %c0_92 = arith.constant 0 : index
    %97 = vector.load %arg9[%c0_89, %c1_90, %c0_91, %c0_92] : memref<1x4x2x128xf32, #tpu.memory_space<vmem>>, vector<1x1x2x128xf32>
    %98 = vector.shape_cast %97 : vector<1x1x2x128xf32> to vector<2x128xf32>
    %99 = vector.shape_cast %96 : vector<2x128xf32> to vector<1x1x2x128xf32>
    tpu.vector_store %arg9[%c0_89, %c1_90, %c0_91, %c0_92], %99 {strides = array<i32>} : memref<1x4x2x128xf32, #tpu.memory_space<vmem>>, vector<1x1x2x128xf32>,
    %100 = arith.addf %88, %91 : vector<2x128xf32>
    %c0_93 = arith.constant 0 : index
    %c1_94 = arith.constant 1 : index
    %c0_95 = arith.constant 0 : index
    %c0_96 = arith.constant 0 : index
    %101 = vector.load %arg10[%c0_93, %c1_94, %c0_95, %c0_96] : memref<1x4x2x128xf32, #tpu.memory_space<vmem>>, vector<1x1x2x128xf32>
    %102 = vector.shape_cast %101 : vector<1x1x2x128xf32> to vector<2x128xf32>
    %103 = vector.shape_cast %100 : vector<2x128xf32> to vector<1x1x2x128xf32>
    tpu.vector_store %arg10[%c0_93, %c1_94, %c0_95, %c0_96], %103 {strides = array<i32>} : memref<1x4x2x128xf32, #tpu.memory_space<vmem>>, vector<1x1x2x128xf32>,
    %c0_97 = arith.constant 0 : index
    %c0_98 = arith.constant 0 : index
    %c0_99 = arith.constant 0 : index
    %c0_100 = arith.constant 0 : index
    %104 = vector.load %arg6[%c0_97, %c0_98, %c0_99, %c0_100] : memref<1x3x2x128xf32, #tpu.memory_space<vmem>>, vector<1x1x2x128xf32>
    %105 = vector.shape_cast %104 : vector<1x1x2x128xf32> to vector<2x128xf32>
    %c2_101 = arith.constant 2 : index
    %c0_102 = arith.constant 0 : index
    %106 = memref.load %arg2[%c2_101, %c0_102] : memref<4x3xf32, #tpu.memory_space<smem>>
    %107 = vector.broadcast %106 : f32 to vector<2x128xf32>
    %108 = arith.mulf %105, %107 : vector<2x128xf32>
    %c0_103 = arith.constant 0 : index
    %c0_104 = arith.constant 0 : index
    %c0_105 = arith.constant 0 : index
    %c0_106 = arith.constant 0 : index
    %109 = vector.load %arg7[%c0_103, %c0_104, %c0_105, %c0_106] : memref<1x3x2x128xf32, #tpu.memory_space<vmem>>, vector<1x1x2x128xf32>
    %110 = vector.shape_cast %109 : vector<1x1x2x128xf32> to vector<2x128xf32>
    %c2_107 = arith.constant 2 : index
    %c0_108 = arith.constant 0 : index
    %111 = memref.load %arg4[%c2_107, %c0_108] : memref<4x3xf32, #tpu.memory_space<smem>>
    %112 = vector.broadcast %111 : f32 to vector<2x128xf32>
    %113 = arith.mulf %110, %112 : vector<2x128xf32>
    %c0_109 = arith.constant 0 : index
    %c1_110 = arith.constant 1 : index
    %c0_111 = arith.constant 0 : index
    %c0_112 = arith.constant 0 : index
    %114 = vector.load %arg6[%c0_109, %c1_110, %c0_111, %c0_112] : memref<1x3x2x128xf32, #tpu.memory_space<vmem>>, vector<1x1x2x128xf32>
    %115 = vector.shape_cast %114 : vector<1x1x2x128xf32> to vector<2x128xf32>
    %c2_113 = arith.constant 2 : index
    %c1_114 = arith.constant 1 : index
    %116 = memref.load %arg2[%c2_113, %c1_114] : memref<4x3xf32, #tpu.memory_space<smem>>
    %117 = vector.broadcast %116 : f32 to vector<2x128xf32>
    %118 = arith.mulf %115, %117 : vector<2x128xf32>
    %119 = arith.addf %108, %118 : vector<2x128xf32>
    %c0_115 = arith.constant 0 : index
    %c1_116 = arith.constant 1 : index
    %c0_117 = arith.constant 0 : index
    %c0_118 = arith.constant 0 : index
    %120 = vector.load %arg7[%c0_115, %c1_116, %c0_117, %c0_118] : memref<1x3x2x128xf32, #tpu.memory_space<vmem>>, vector<1x1x2x128xf32>
    %121 = vector.shape_cast %120 : vector<1x1x2x128xf32> to vector<2x128xf32>
    %c2_119 = arith.constant 2 : index
    %c1_120 = arith.constant 1 : index
    %122 = memref.load %arg4[%c2_119, %c1_120] : memref<4x3xf32, #tpu.memory_space<smem>>
    %123 = vector.broadcast %122 : f32 to vector<2x128xf32>
    %124 = arith.mulf %121, %123 : vector<2x128xf32>
    %125 = arith.addf %113, %124 : vector<2x128xf32>
    %c0_121 = arith.constant 0 : index
    %c2_122 = arith.constant 2 : index
    %c0_123 = arith.constant 0 : index
    %c0_124 = arith.constant 0 : index
    %126 = vector.load %arg6[%c0_121, %c2_122, %c0_123, %c0_124] : memref<1x3x2x128xf32, #tpu.memory_space<vmem>>, vector<1x1x2x128xf32>
    %127 = vector.shape_cast %126 : vector<1x1x2x128xf32> to vector<2x128xf32>
    %c2_125 = arith.constant 2 : index
    %c2_126 = arith.constant 2 : index
    %128 = memref.load %arg2[%c2_125, %c2_126] : memref<4x3xf32, #tpu.memory_space<smem>>
    %129 = vector.broadcast %128 : f32 to vector<2x128xf32>
    %130 = arith.mulf %127, %129 : vector<2x128xf32>
    %131 = arith.addf %119, %130 : vector<2x128xf32>
    %c0_127 = arith.constant 0 : index
    %c2_128 = arith.constant 2 : index
    %c0_129 = arith.constant 0 : index
    %c0_130 = arith.constant 0 : index
    %132 = vector.load %arg7[%c0_127, %c2_128, %c0_129, %c0_130] : memref<1x3x2x128xf32, #tpu.memory_space<vmem>>, vector<1x1x2x128xf32>
    %133 = vector.shape_cast %132 : vector<1x1x2x128xf32> to vector<2x128xf32>
    %c2_131 = arith.constant 2 : index
    %c2_132 = arith.constant 2 : index
    %134 = memref.load %arg4[%c2_131, %c2_132] : memref<4x3xf32, #tpu.memory_space<smem>>
    %135 = vector.broadcast %134 : f32 to vector<2x128xf32>
    %136 = arith.mulf %133, %135 : vector<2x128xf32>
    %137 = arith.addf %125, %136 : vector<2x128xf32>
    %c2_133 = arith.constant 2 : index
    %138 = memref.load %arg3[%c2_133] : memref<4xf32, #tpu.memory_space<smem>>
    %139 = vector.broadcast %138 : f32 to vector<2x128xf32>
    %140 = arith.addf %131, %139 : vector<2x128xf32>
    %c2_134 = arith.constant 2 : index
    %141 = memref.load %arg5[%c2_134] : memref<4xf32, #tpu.memory_space<smem>>
    %142 = vector.broadcast %141 : f32 to vector<2x128xf32>
    %143 = arith.addf %137, %142 : vector<2x128xf32>
    %144 = arith.subf %140, %143 : vector<2x128xf32>
    %c0_135 = arith.constant 0 : index
    %c2_136 = arith.constant 2 : index
    %c0_137 = arith.constant 0 : index
    %c0_138 = arith.constant 0 : index
    %145 = vector.load %arg8[%c0_135, %c2_136, %c0_137, %c0_138] : memref<1x4x2x128xf32, #tpu.memory_space<vmem>>, vector<1x1x2x128xf32>
    %146 = vector.shape_cast %145 : vector<1x1x2x128xf32> to vector<2x128xf32>
    %147 = vector.shape_cast %144 : vector<2x128xf32> to vector<1x1x2x128xf32>
    tpu.vector_store %arg8[%c0_135, %c2_136, %c0_137, %c0_138], %147 {strides = array<i32>} : memref<1x4x2x128xf32, #tpu.memory_space<vmem>>, vector<1x1x2x128xf32>,
    %148 = arith.subf %143, %140 : vector<2x128xf32>
    %c0_139 = arith.constant 0 : index
    %c2_140 = arith.constant 2 : index
    %c0_141 = arith.constant 0 : index
    %c0_142 = arith.constant 0 : index
    %149 = vector.load %arg9[%c0_139, %c2_140, %c0_141, %c0_142] : memref<1x4x2x128xf32, #tpu.memory_space<vmem>>, vector<1x1x2x128xf32>
    %150 = vector.shape_cast %149 : vector<1x1x2x128xf32> to vector<2x128xf32>
    %151 = vector.shape_cast %148 : vector<2x128xf32> to vector<1x1x2x128xf32>
    tpu.vector_store %arg9[%c0_139, %c2_140, %c0_141, %c0_142], %151 {strides = array<i32>} : memref<1x4x2x128xf32, #tpu.memory_space<vmem>>, vector<1x1x2x128xf32>,
    %152 = arith.addf %140, %143 : vector<2x128xf32>
    %c0_143 = arith.constant 0 : index
    %c2_144 = arith.constant 2 : index
    %c0_145 = arith.constant 0 : index
    %c0_146 = arith.constant 0 : index
    %153 = vector.load %arg10[%c0_143, %c2_144, %c0_145, %c0_146] : memref<1x4x2x128xf32, #tpu.memory_space<vmem>>, vector<1x1x2x128xf32>
    %154 = vector.shape_cast %153 : vector<1x1x2x128xf32> to vector<2x128xf32>
    %155 = vector.shape_cast %152 : vector<2x128xf32> to vector<1x1x2x128xf32>
    tpu.vector_store %arg10[%c0_143, %c2_144, %c0_145, %c0_146], %155 {strides = array<i32>} : memref<1x4x2x128xf32, #tpu.memory_space<vmem>>, vector<1x1x2x128xf32>,
    %c0_147 = arith.constant 0 : index
    %c0_148 = arith.constant 0 : index
    %c0_149 = arith.constant 0 : index
    %c0_150 = arith.constant 0 : index
    %156 = vector.load %arg6[%c0_147, %c0_148, %c0_149, %c0_150] : memref<1x3x2x128xf32, #tpu.memory_space<vmem>>, vector<1x1x2x128xf32>
    %157 = vector.shape_cast %156 : vector<1x1x2x128xf32> to vector<2x128xf32>
    %c3 = arith.constant 3 : index
    %c0_151 = arith.constant 0 : index
    %158 = memref.load %arg2[%c3, %c0_151] : memref<4x3xf32, #tpu.memory_space<smem>>
    %159 = vector.broadcast %158 : f32 to vector<2x128xf32>
    %160 = arith.mulf %157, %159 : vector<2x128xf32>
    %c0_152 = arith.constant 0 : index
    %c0_153 = arith.constant 0 : index
    %c0_154 = arith.constant 0 : index
    %c0_155 = arith.constant 0 : index
    %161 = vector.load %arg7[%c0_152, %c0_153, %c0_154, %c0_155] : memref<1x3x2x128xf32, #tpu.memory_space<vmem>>, vector<1x1x2x128xf32>
    %162 = vector.shape_cast %161 : vector<1x1x2x128xf32> to vector<2x128xf32>
    %c3_156 = arith.constant 3 : index
    %c0_157 = arith.constant 0 : index
    %163 = memref.load %arg4[%c3_156, %c0_157] : memref<4x3xf32, #tpu.memory_space<smem>>
    %164 = vector.broadcast %163 : f32 to vector<2x128xf32>
    %165 = arith.mulf %162, %164 : vector<2x128xf32>
    %c0_158 = arith.constant 0 : index
    %c1_159 = arith.constant 1 : index
    %c0_160 = arith.constant 0 : index
    %c0_161 = arith.constant 0 : index
    %166 = vector.load %arg6[%c0_158, %c1_159, %c0_160, %c0_161] : memref<1x3x2x128xf32, #tpu.memory_space<vmem>>, vector<1x1x2x128xf32>
    %167 = vector.shape_cast %166 : vector<1x1x2x128xf32> to vector<2x128xf32>
    %c3_162 = arith.constant 3 : index
    %c1_163 = arith.constant 1 : index
    %168 = memref.load %arg2[%c3_162, %c1_163] : memref<4x3xf32, #tpu.memory_space<smem>>
    %169 = vector.broadcast %168 : f32 to vector<2x128xf32>
    %170 = arith.mulf %167, %169 : vector<2x128xf32>
    %171 = arith.addf %160, %170 : vector<2x128xf32>
    %c0_164 = arith.constant 0 : index
    %c1_165 = arith.constant 1 : index
    %c0_166 = arith.constant 0 : index
    %c0_167 = arith.constant 0 : index
    %172 = vector.load %arg7[%c0_164, %c1_165, %c0_166, %c0_167] : memref<1x3x2x128xf32, #tpu.memory_space<vmem>>, vector<1x1x2x128xf32>
    %173 = vector.shape_cast %172 : vector<1x1x2x128xf32> to vector<2x128xf32>
    %c3_168 = arith.constant 3 : index
    %c1_169 = arith.constant 1 : index
    %174 = memref.load %arg4[%c3_168, %c1_169] : memref<4x3xf32, #tpu.memory_space<smem>>
    %175 = vector.broadcast %174 : f32 to vector<2x128xf32>
    %176 = arith.mulf %173, %175 : vector<2x128xf32>
    %177 = arith.addf %165, %176 : vector<2x128xf32>
    %c0_170 = arith.constant 0 : index
    %c2_171 = arith.constant 2 : index
    %c0_172 = arith.constant 0 : index
    %c0_173 = arith.constant 0 : index
    %178 = vector.load %arg6[%c0_170, %c2_171, %c0_172, %c0_173] : memref<1x3x2x128xf32, #tpu.memory_space<vmem>>, vector<1x1x2x128xf32>
    %179 = vector.shape_cast %178 : vector<1x1x2x128xf32> to vector<2x128xf32>
    %c3_174 = arith.constant 3 : index
    %c2_175 = arith.constant 2 : index
    %180 = memref.load %arg2[%c3_174, %c2_175] : memref<4x3xf32, #tpu.memory_space<smem>>
    %181 = vector.broadcast %180 : f32 to vector<2x128xf32>
    %182 = arith.mulf %179, %181 : vector<2x128xf32>
    %183 = arith.addf %171, %182 : vector<2x128xf32>
    %c0_176 = arith.constant 0 : index
    %c2_177 = arith.constant 2 : index
    %c0_178 = arith.constant 0 : index
    %c0_179 = arith.constant 0 : index
    %184 = vector.load %arg7[%c0_176, %c2_177, %c0_178, %c0_179] : memref<1x3x2x128xf32, #tpu.memory_space<vmem>>, vector<1x1x2x128xf32>
    %185 = vector.shape_cast %184 : vector<1x1x2x128xf32> to vector<2x128xf32>
    %c3_180 = arith.constant 3 : index
    %c2_181 = arith.constant 2 : index
    %186 = memref.load %arg4[%c3_180, %c2_181] : memref<4x3xf32, #tpu.memory_space<smem>>
    %187 = vector.broadcast %186 : f32 to vector<2x128xf32>
    %188 = arith.mulf %185, %187 : vector<2x128xf32>
    %189 = arith.addf %177, %188 : vector<2x128xf32>
    %c3_182 = arith.constant 3 : index
    %190 = memref.load %arg3[%c3_182] : memref<4xf32, #tpu.memory_space<smem>>
    %191 = vector.broadcast %190 : f32 to vector<2x128xf32>
    %192 = arith.addf %183, %191 : vector<2x128xf32>
    %c3_183 = arith.constant 3 : index
    %193 = memref.load %arg5[%c3_183] : memref<4xf32, #tpu.memory_space<smem>>
    %194 = vector.broadcast %193 : f32 to vector<2x128xf32>
    %195 = arith.addf %189, %194 : vector<2x128xf32>
    %196 = arith.subf %192, %195 : vector<2x128xf32>
    %c0_184 = arith.constant 0 : index
    %c3_185 = arith.constant 3 : index
    %c0_186 = arith.constant 0 : index
    %c0_187 = arith.constant 0 : index
    %197 = vector.load %arg8[%c0_184, %c3_185, %c0_186, %c0_187] : memref<1x4x2x128xf32, #tpu.memory_space<vmem>>, vector<1x1x2x128xf32>
    %198 = vector.shape_cast %197 : vector<1x1x2x128xf32> to vector<2x128xf32>
    %199 = vector.shape_cast %196 : vector<2x128xf32> to vector<1x1x2x128xf32>
    tpu.vector_store %arg8[%c0_184, %c3_185, %c0_186, %c0_187], %199 {strides = array<i32>} : memref<1x4x2x128xf32, #tpu.memory_space<vmem>>, vector<1x1x2x128xf32>,
    %200 = arith.subf %195, %192 : vector<2x128xf32>
    %c0_188 = arith.constant 0 : index
    %c3_189 = arith.constant 3 : index
    %c0_190 = arith.constant 0 : index
    %c0_191 = arith.constant 0 : index
    %201 = vector.load %arg9[%c0_188, %c3_189, %c0_190, %c0_191] : memref<1x4x2x128xf32, #tpu.memory_space<vmem>>, vector<1x1x2x128xf32>
    %202 = vector.shape_cast %201 : vector<1x1x2x128xf32> to vector<2x128xf32>
    %203 = vector.shape_cast %200 : vector<2x128xf32> to vector<1x1x2x128xf32>
    tpu.vector_store %arg9[%c0_188, %c3_189, %c0_190, %c0_191], %203 {strides = array<i32>} : memref<1x4x2x128xf32, #tpu.memory_space<vmem>>, vector<1x1x2x128xf32>,
    %204 = arith.addf %192, %195 : vector<2x128xf32>
    %c0_192 = arith.constant 0 : index
    %c3_193 = arith.constant 3 : index
    %c0_194 = arith.constant 0 : index
    %c0_195 = arith.constant 0 : index
    %205 = vector.load %arg10[%c0_192, %c3_193, %c0_194, %c0_195] : memref<1x4x2x128xf32, #tpu.memory_space<vmem>>, vector<1x1x2x128xf32>
    %206 = vector.shape_cast %205 : vector<1x1x2x128xf32> to vector<2x128xf32>
    %207 = vector.shape_cast %204 : vector<2x128xf32> to vector<1x1x2x128xf32>
    tpu.vector_store %arg10[%c0_192, %c3_193, %c0_194, %c0_195], %207 {strides = array<i32>} : memref<1x4x2x128xf32, #tpu.memory_space<vmem>>, vector<1x1x2x128xf32>,
    return
  }
  func.func @transform_0(%arg0: i32, %arg1: i32) -> (i32, i32) {
    %c0_i32 = arith.constant 0 : i32
    %c0_i32_0 = arith.constant 0 : i32
    %c0_i32_1 = arith.constant 0 : i32
    return %c0_i32, %c0_i32_0 : i32, i32
  }
  func.func @transform_1(%arg0: i32, %arg1: i32) -> i32 {
    %c0_i32 = arith.constant 0 : i32
    %c0_i32_0 = arith.constant 0 : i32
    return %c0_i32 : i32
  }
  func.func @transform_2(%arg0: i32, %arg1: i32) -> (i32, i32) {
    %c0_i32 = arith.constant 0 : i32
    %c0_i32_0 = arith.constant 0 : i32
    %c0_i32_1 = arith.constant 0 : i32
    return %c0_i32, %c0_i32_0 : i32, i32
  }
  func.func @transform_3(%arg0: i32, %arg1: i32) -> i32 {
    %c0_i32 = arith.constant 0 : i32
    %c0_i32_0 = arith.constant 0 : i32
    return %c0_i32 : i32
  }
  func.func @transform_4(%arg0: i32, %arg1: i32) -> (i32, i32, i32, i32) {
    %c0_i32 = arith.constant 0 : i32
    %c0_i32_0 = arith.constant 0 : i32
    %c0_i32_1 = arith.constant 0 : i32
    return %arg0, %c0_i32, %arg1, %c0_i32_0 : i32, i32, i32, i32
  }
  func.func @transform_5(%arg0: i32, %arg1: i32) -> (i32, i32, i32, i32) {
    %c0_i32 = arith.constant 0 : i32
    %c0_i32_0 = arith.constant 0 : i32
    %c0_i32_1 = arith.constant 0 : i32
    return %arg0, %c0_i32, %arg1, %c0_i32_0 : i32, i32, i32, i32
  }
  func.func @transform_6(%arg0: i32, %arg1: i32) -> (i32, i32, i32, i32) {
    %c0_i32 = arith.constant 0 : i32
    %c0_i32_0 = arith.constant 0 : i32
    %c0_i32_1 = arith.constant 0 : i32
    return %arg0, %c0_i32, %arg1, %c0_i32_0 : i32, i32, i32, i32
  }
  func.func @transform_7(%arg0: i32, %arg1: i32) -> (i32, i32, i32, i32) {
    %c0_i32 = arith.constant 0 : i32
    %c0_i32_0 = arith.constant 0 : i32
    %c0_i32_1 = arith.constant 0 : i32
    return %arg0, %c0_i32, %arg1, %c0_i32_0 : i32, i32, i32, i32
  }
  func.func @transform_8(%arg0: i32, %arg1: i32) -> (i32, i32, i32, i32) {
    %c0_i32 = arith.constant 0 : i32
    %c0_i32_0 = arith.constant 0 : i32
    %c0_i32_1 = arith.constant 0 : i32
    return %arg0, %c0_i32, %arg1, %c0_i32_0 : i32, i32, i32, i32
  }
}

</mosaic_0001>

<bundles_post_ra>
// kernel: tpu_custom_call.1
= control target key start
LH: loop header
LB: loop body
LE: loop exit
PB: predicated region body
PF: predicated region fallthrough
CT: control target
= control target key end

     0   :  { %s1875_s0 = inlined_call_operand.hbm [shape: f32[4,3], index: 0, kind: input, shape index: {}]   ;;  %s1876_s1 = inlined_call_operand.vmem [shape: f32[4], index: 1, kind: input, shape index: {}]   ;;  %s1877_s2 = inlined_call_operand.hbm [shape: f32[4,3], index: 2, kind: input, shape index: {}]   ;;  %s1878_s3 = inlined_call_operand.vmem [shape: f32[4], index: 3, kind: input, shape index: {}]   ;;  %s1879_s4 = inlined_call_operand.vmem [shape: f32[2,3,2,128], index: 4, kind: input, shape index: {}]   ;;  %s1880_s5 = inlined_call_operand.hbm [shape: f32[2,3,2,128], index: 5, kind: input, shape index: {}]   ;;  %s1881_s6 = inlined_call_operand.hbm [shape: f32[2,4,2,128], index: 6, kind: output, shape index: {0}]   ;;  %s1882_s7 = inlined_call_operand.hbm [shape: f32[2,4,2,128], index: 7, kind: output, shape index: {1}]   ;;  %s1883_s8 = inlined_call_operand.hbm [shape: f32[2,4,2,128], index: 8, kind: output, shape index: {2}]  }
   0x1   :  { %1890 = sst [smem:[#allocation27_spill]] %s1875_s0 }
   0x2   :  { %1891 = sst [smem:[#allocation28_spill]] %s1876_s1 }
   0x3   :  { %1892 = sst [smem:[#allocation29_spill]] %s1877_s2 }
   0x4   :  { %1893 = sst [smem:[#allocation30_spill]] %s1878_s3 }
   0x5   :  { %1894 = sst [smem:[#allocation31_spill]] %s1879_s4 }
   0x6   :  { %1895 = sst [smem:[#allocation32_spill]] %s1880_s5 }
   0x7   :  { %14 = vsyncpa [#allocation5], 0 }
   0x8   :  { %15 = vsyncpa [#allocation6], 0 }
   0x9   :  { %16 = vsyncpa [#allocation9], 0 }
   0xa   :  { %17 = vsyncpa [#allocation11], 0 }
   0xb   :  { %18 = vsyncpa [#allocation3], 0 }
   0xc   :  { %20 = vsyncpa [#allocation3 + $0x1], 0 }
   0xd   :  { %21 = vsyncpa [#allocation4], 0 }
   0xe   :  { %23 = vsyncpa [#allocation4 + $0x1], 0 }
   0xf   :  { %24 = vsyncpa [#allocation15], 0 }
  0x10   :  { %26 = vsyncpa [#allocation15 + $0x1], 0  ;;  %s1396_s27 = smov 0   ;;  %s1398_s28 = smov 0  }
  0x11   :  { %s1400_s29 = smov 0   ;;  %s1402_s30 = smov 0  }
  0x12   :  { %s1404_s9 = smov 0   ;;  %s1406_s10 = smov 0  }
  0x13 LB: > { %1896 = sst [smem:[#allocation24_spill]] %s1333_s9  ;;  %s1427_s11 = sadd.s32 4294967295, %s1337_s10   ;;  %s1337_s10 = sphi %s1406_s10, %s32_s10   ;;  %s1333_s9 = sphi %s1404_s9, %s1927_s9   ;;  %s1329_s30 = sphi %s1402_s30, %s1926_s30   ;;  %s1325_s29 = sphi %s1400_s29, %s1930_s29   ;;  %s1321_s28 = sphi %s1398_s28, %s1929_s28   ;;  %s1317_s27 = sphi %s1396_s27, %s1928_s27  }
  0x14   : > { %s1885_s12 = sadd.s32 4294967294, %s1337_s10   ;;  %p178_p0 = scmp.ne.s32.totalorder %s1321_s28, %s1317_s27 }
  0x15   : > { %p1884_p1 = scmp.eq.s32.totalorder %s1427_s11, 0  ;;  %p210_p3 = scmp.eq.s32.totalorder %s1885_s12, 1 }
  0x16   : > { %p889_p5 = scmp.ge.s32.totalorder %s1337_s10, 1  ;;  %p273_p7 = scmp.lt.s32.totalorder %s1337_s10, 3 }
  0x17   : > { %p1438_p4 = por %p1884_p1, %p178_p0  ;;  %p1443_p6 = por %p210_p3, %p178_p0 }
  0x18   : > { %p1448_p8 = pnand %p889_p5, %p273_p7  ;;  %s1900_s1 = sld [smem:[#allocation28_spill]] }
  0x19   : > { %s1897_s13 = scalar_select %p1438_p4, 1, 0 }
  0x1a   : > { %s1898_s14 = scalar_select %p1443_p6, 1, 0 }
  0x1b   : > { %p1000_p10 = pneg %p1448_p8  ;;  %s1901_s3 = sld [smem:[#allocation30_spill]] }
  0x1c   : > { %s1903_s0 = sld [smem:[#allocation27_spill]] }
  0x1d   : > { %p1463_p11 = pnand %p1000_p10, %p1884_p1 }
  0x1e   : > { %s295_s18 = sshll.u32 %s1900_s1, 4  ;;  %s296_s18 = int_to_ptr.vmem [resolvable:$true] %s295_s18 }
  0x1f   : > { %p1095_p13 = pneg %p1463_p11 }
  0x21   : > { %s315_s21 = sshll.u32 %s1901_s3, 4  ;;  %s1467_s21 = int_to_ptr.vmem [resolvable:$true] %s315_s21 }
  0x22   : > { %s1093_s25 = scalar_lea.hbm %s1903_s0, 64 }
  0x23   : > { %p1094_p12 = scmp.ne.s32.totalorder %s1903_s0, %s1093_s25  ;;  %p1100_p5 = scmp.lt.u32.totalorder %s1093_s25, %s1903_s0 }
  0x25   : > { %p1096_p0 = pnand %p1095_p13, %p1094_p12 }
  0x27   : > { %p1097_p3 = pneg %p1096_p0 }
  0x29   : > { %p1102_p7 = pnand %p1100_p5, %p1097_p3 }
  0x2b   : > { %1105 = shalt.err (!%p1102_p7)
}
  0x2c   : > { %s1339_s20 = smov [#allocation2]   ;;  %s1106_s26 = scalar_lea.vmem %s296_s18, 16 }
  0x2d   : > { %1003 = dma.hbm_to_smem (!%p1463_p11), %s1903_s0, 64, %s1339_s20, [#allocation5]  }
  0x2e   : > { %p1107_p10 = scmp.ne.s32.totalorder %s296_s18, %s1106_s26  ;;  %p1114_p9 = scmp.lt.s32.totalorder %s296_s18, %s296_s18 }
  0x2f   : > { %p1115_p1 = scmp.lt.s32.totalorder %s1106_s26, %s1106_s26 }
  0x30   : > { %p1109_p12 = pnand %p1107_p10, %p1095_p13 }
  0x31   : > { %p1116_p2 = por %p1115_p1, %p1114_p9 }
  0x32   : > { %p1110_p0 = pneg %p1109_p12 }
  0x34   : > { %p1117_p6 = pnand %p1116_p2, %p1110_p0 }
  0x36   : > { %1120 = shalt.err (!%p1117_p6)
}
  0x37   : > { %s1340_s25 = smov [#allocation7]   ;;  %s1904_s2 = sld [smem:[#allocation29_spill]] }
  0x38   : > { %1006 = dma.vmem_to_smem (!%p1463_p11), %s296_s18, 16, %s1340_s25, [#allocation6]  }
  0x3d   : > { %s1121_s19 = scalar_lea.hbm %s1904_s2, 64 }
  0x3e   : > { %p1122_p3 = scmp.ne.s32.totalorder %s1904_s2, %s1121_s19  ;;  %p1128_p1 = scmp.lt.u32.totalorder %s1121_s19, %s1904_s2 }
  0x40   : > { %p1124_p5 = pnand %p1122_p3, %p1095_p13 }
  0x42   : > { %p1125_p7 = pneg %p1124_p5 }
  0x44   : > { %p1130_p2 = pnand %p1128_p1, %p1125_p7 }
  0x46   : > { %1133 = shalt.err (!%p1130_p2)
}
  0x47   : > { %s1341_s12 = smov [#allocation8]   ;;  %s1134_s16 = scalar_lea.vmem %s1467_s21, 16 }
  0x48   : > { %1009 = dma.hbm_to_smem (!%p1463_p11), %s1904_s2, 64, %s1341_s12, [#allocation9]  }
  0x49   : > { %p1135_p6 = scmp.ne.s32.totalorder %s1467_s21, %s1134_s16  ;;  %p1142_p12 = scmp.lt.s32.totalorder %s1467_s21, %s1467_s21 }
  0x4a   : > { %p1143_p0 = scmp.lt.s32.totalorder %s1134_s16, %s1134_s16 }
  0x4b   : > { %p1137_p9 = pnand %p1135_p6, %p1095_p13 }
  0x4c   : > { %p1144_p3 = por %p1143_p0, %p1142_p12 }
  0x4d   : > { %p1138_p10 = pneg %p1137_p9 }
  0x4f   : > { %p1145_p5 = pnand %p1144_p3, %p1138_p10 }
  0x51   : > { %1148 = shalt.err (!%p1145_p5)
}
  0x52   : > { %s1342_s17 = smov [#allocation10]   ;;  %s44_s12 = sadd.s32 1, %s1333_s9 }
  0x53   : > { %1012 = dma.vmem_to_smem (!%p1463_p11), %s1467_s21, 16, %s1342_s17, [#allocation11]  }
  0x54   : > { %s165_s19 = sadd.s32 1, %s1325_s29  ;;  %p46_p13 = scmp.ge.s32.totalorder %s44_s12, 2 }
  0x55   : > { %p172_p7 = scmp.ne.s32.totalorder %s1325_s29, %s1321_s28  ;;  %p173_p1 = scmp.eq.s32.totalorder %s1337_s10, 0 }
  0x56   : > { %p1031_p2 = scmp.lt.s32.totalorder %s1337_s10, 2  ;;  %s1932_s12 = smov (%p46_p13, %s44_s12), 0 }
  0x57   : > { %1905 = sst [smem:[#allocation25_spill]] %s1932_s12  ;;  %p174_p6 = por %p173_p1, %p172_p7 }
  0x58   : > { %p1906_p9 = scmp.eq.s32.totalorder %s1427_s11, 1  ;;  %s160_s20 = ssub.s32 %s1333_s9, %s1932_s12 }
  0x59   : > { %s337_s23 = sand.u32 1, %s1325_s29   ;;  %p163_p12 = scmp.eq.s32.totalorder %s160_s20, 0 }
  0x5a   : > { %p1530_p10 = por %p1906_p9, %p172_p7  ;;  %s972_s21 = smul.u32 6, %s337_s23 }
  0x5b   : > { %p1537_p11 = pnand %p1031_p2, %p174_p6  ;;  %s973_s18 = smul.u32 96, %s1333_s9 }
  0x5c   : > { %s1907_s22 = scalar_select %p1530_p10, 1, 0 }
  0x5d   : > { %s1542_s26 = scalar_select %p163_p12, %s1325_s29, %s165_s19  }
  0x5e   : > { %s341_s25 = scalar_lea.vmem [#allocation12], %s972_s21  ;;  %s1910_s5 = sld [smem:[#allocation32_spill]] }
  0x5f   : > { %1909 = sst [smem:[#allocation26_spill]] %s1542_s26  ;;  %s349_s16 = sshll.u32 %s341_s25, 4  ;;  %s1550_s16 = int_to_ptr.vmem [resolvable:$true] %s349_s16 }
  0x60   : > { %s1552_s20 = scalar_lea.sflag [#allocation3], %s337_s23  ;;  %p1151_p3 = pneg %p1537_p11 }
  0x64   : > { %s1548_s1 = scalar_lea.hbm %s1910_s5, %s973_s18  ;;  %s1154_s21 = scalar_lea.hbm %s1910_s5, 192 }
  0x65   : > { %s1149_s2 = scalar_lea.hbm %s1548_s1, 96  ;;  %p1155_p7 = scmp.lt.u32.totalorder %s1548_s1, %s1910_s5 }
  0x66   : > { %p1150_p0 = scmp.ne.s32.totalorder %s1548_s1, %s1149_s2  ;;  %p1156_p1 = scmp.lt.u32.totalorder %s1154_s21, %s1149_s2 }
  0x67   : > { %p1158_p6 = scmp.lt.u32.totalorder %s1149_s2, %s1548_s1 }
  0x68   : > { %p1152_p5 = pnand %p1151_p3, %p1150_p0  ;;  %p1157_p2 = por %p1156_p1, %p1155_p7 }
  0x6a   : > { %p1153_p13 = pneg %p1152_p5  ;;  %p1159_p9 = por %p1158_p6, %p1157_p2 }
  0x6c   : > { %p1160_p12 = pnand %p1159_p9, %p1153_p13 }
  0x6e   : > { %1163 = shalt.err (!%p1160_p12)
}
  0x6f   : > { %s1164_s23 = scalar_lea.vmem %s1550_s16, 96  ;;  %s1343_s17 = smov [#allocation12]  }
  0x70   : > { %p1165_p0 = scmp.ne.s32.totalorder %s1550_s16, %s1164_s23  ;;  %s1169_s19 = sshll.u32 %s1343_s17, 4  ;;  %s1170_s19 = int_to_ptr.vmem [resolvable:$false] %s1169_s19 }
  0x71   : > { %s1171_s0 = scalar_lea.vmem %s1170_s19, 192  ;;  %p1172_p4 = scmp.lt.s32.totalorder %s1550_s16, %s1170_s19 }
  0x72   : > { %p1167_p5 = pnand %p1165_p0, %p1151_p3  ;;  %p1173_p7 = scmp.lt.s32.totalorder %s1171_s0, %s1164_s23 }
  0x74   : > { %p1168_p10 = pneg %p1167_p5  ;;  %p1174_p1 = por %p1173_p7, %p1172_p4 }
  0x76   : > { %p1175_p2 = pnand %p1174_p1, %p1168_p10 }
  0x78   : > { %1178 = shalt.err (!%p1175_p2)
}
  0x79   : > { %s1344_s2 = smov 32   ;;  %s1345_s21 = smov 2  }
  0x7a   : > { %1016 = dma.hbm_to_vmem [thread:$0]  (!%p1537_p11), %s1548_s1, 96, %s1550_s16, %s1552_s20, %s1344_s2, %s1344_s2, %s1345_s21  }
  0x7b   : > { %361 = sbr.rel (%p1448_p8) target bundleno = 250 (0xfa), region = 44  ;;  %p1911_p3 = scmp.eq.s32.totalorder (!%p1448_p8), %s1427_s11, 0 }
  0x82   : > { %1288 = dma.done.wait (%p1911_p3), [#allocation5], 64   ;;  %p1912_p13 = pmov %p1911_p3 }
  0x83   : > { %p1913_p4 = pmov %p1911_p3 }
  0x84   : > { %1290 = vsyncadd (%p1912_p13), [#allocation5], 4294967232 }
  0x85   : > { %1292 = dma.done.wait (%p1913_p4), [#allocation6], 16   ;;  %p1914_p10 = pmov %p1911_p3 }
  0x86   : > { %p1915_p6 = pmov %p1911_p3 }
  0x87   : > { %1294 = vsyncadd (%p1914_p10), [#allocation6], 4294967280 }
  0x88   : > { %1296 = dma.done.wait (%p1915_p6), [#allocation9], 64   ;;  %p1916_p11 = pmov %p1911_p3 }
  0x89   : > { %p1917_p8 = pmov %p1911_p3 }
  0x8a   : > { %1298 = vsyncadd (%p1916_p11), [#allocation9], 4294967232 }
  0x8b   : > { %1300 = dma.done.wait (%p1917_p8), [#allocation11], 16   ;;  %p1918_p9 = pmov %p1911_p3 }
  0x8c   : > { %s1599_s1 = sand.u32 1, %s1321_s28   ;;  %p1919_p12 = scmp.ne.s32.totalorder %s1897_s13, 0 }
  0x8d   : > { %1302 = vsyncadd (%p1918_p9), [#allocation11], 4294967280  ;;  %s974_s15 = smul.u32 6, %s1599_s1  ;;  %s380_s24 = scalar_lea.sflag [#allocation3], %s1599_s1 }
  0x8f   : > { %s1603_s16 = scalar_lea.vmem [#allocation12], %s974_s15 }
  0x90   : > { %1304 = dma.done.wait (%p1919_p12), %s380_s24, 96  }
  0x91   : > { %1306 = vsyncadd (%p1919_p12), %s380_s24, 4294967200 }
  0x92   : > { %388 = sfence }
  0x93   : > { %p435_p0 = scmp.lt.s32.totalorder %s1329_s30, 1  ;;  %s1611_s20 = sshll.u32 %s1599_s1, 3  ;;  %v447_v2 = vld [vmem:[%s1603_s16] sm:$0x3]  ;;  %v907_v5 = vld [vmem:[%s1603_s16 + $0x2] sm:$0x3] }
  0x94   : > { %s444_s18 = sld [smem:[#allocation2]]  ;;  %s906_s17 = sld [smem:[#allocation2 + $0x1]]  ;;  %v911_v9 = vld [vmem:[%s1603_s16 + $0x4] sm:$0x3]  ;;  %v491_v19 = vld [vmem:[%s1603_s16] sm:$0x3] }
  0x95   : > { %s436_s25 = scalar_select %p435_p0, %s1329_s30, 1  ;;  %v917_v23 = vld [vmem:[%s1603_s16 + $0x2] sm:$0x3]  ;;  %v921_v29 = vld [vmem:[%s1603_s16 + $0x4] sm:$0x3] }
  0x96   : > { %s448_s23 = sld [smem:[#allocation8]]  ;;  %s908_s0 = sld [smem:[#allocation8 + $0x1]]  ;;  %v534_v39 = vld [vmem:[%s1603_s16] sm:$0x3]  ;;  %v932_v45 = vld [vmem:[%s1603_s16 + $0x2] sm:$0x3] }
  0x97   : > { %s975_s19 = smul.u32 6, %s436_s25  ;;  %s910_s2 = sld [smem:[#allocation2 + $0x2]]  ;;  %v936_v60 = vld [vmem:[%s1603_s16 + $0x4] sm:$0x3] }
  0x98   : > { %s912_s21 = sld [smem:[#allocation8 + $0x2]]  ;;  %s1920_s4 = sld [smem:[#allocation31_spill]] }
  0x99   : > { %s1619_s3 = sld [smem:[#allocation7]]  ;;  %s1642_s15 = sld [smem:[#allocation7 + $0x1]] }
  0x9a   : > { %v445_v1 = vstv %s444_s18  ;;  %s1625_s25 = sld [smem:[#allocation10]]  ;;  %v454_v7 = vstv %s906_s17  ;;  %s1633_s18 = sld [smem:[#allocation2 + $0x81]] }
  0x9b   : > { %s1631_s13 = sld [smem:[#allocation8 + $0x80]]  ;;  %s1637_s17 = sld [smem:[#allocation2 + $0x82]] }
  0x9c   : > { %v449_v6 = vstv %s448_s23  ;;  %v460_v12 = vstv %s908_s0  ;;  %s1635_s23 = sld [smem:[#allocation8 + $0x81]]  ;;  %s1640_s0 = sld [smem:[#allocation8 + $0x82]] }
  0x9d   : > { %v450_v10 = vmul.f32 %v449_v6, %v447_v2  ;;  %v461_v13 = vmul.f32 %v907_v5, %v460_v12  ;;  %v466_v14 = vstv %s910_s2  ;;  %s1647_s2 = sld [smem:[#allocation10 + $0x1]]  ;;  %s1661_s12 = sld [smem:[#allocation2 + $0x102]]  ;;  %v577_v6 = vld [vmem:[%s1603_s16] sm:$0x3]  ;;  %v947_v12 = vld [vmem:[%s1603_s16 + $0x2] sm:$0x3] }
  0x9e   : > { %s1617_s24 = scalar_lea.vmem %s1920_s4, %s975_s19  ;;  %s1629_s19 = sld [smem:[#allocation2 + $0x80]]  ;;  %v472_v15 = vstv %s912_s21 }
  0x9f   : > { %v443_v0 = vld [vmem:[%s1617_s24] sm:$0x3]  ;;  %v905_v3 = vld [vmem:[%s1617_s24 + $0x2] sm:$0x3]  ;;  %v909_v8 = vld [vmem:[%s1617_s24 + $0x4] sm:$0x3]  ;;  %v473_v18 = vmul.f32 %v911_v9, %v472_v15  ;;  %v462_v20 = vadd.f32 %v461_v13, %v450_v10  ;;  %v476_v21 = vstv %s1619_s3 }
  0xa0   : > { %v446_v4 = vmul.f32 %v445_v1, %v443_v0  ;;  %v455_v11 = vmul.f32 %v905_v3, %v454_v7  ;;  %v467_v17 = vmul.f32 %v909_v8, %v466_v14  ;;  %v487_v22 = vld [vmem:[%s1617_s24] sm:$0x3]  ;;  %s1649_s21 = sld [smem:[#allocation2 + $0x100]]  ;;  %v479_v25 = vstv %s1625_s25  ;;  %v915_v26 = vld [vmem:[%s1617_s24 + $0x2] sm:$0x3]  ;;  %s1655_s5 = sld [smem:[#allocation2 + $0x101]] }
  0xa1   : > { %s1653_s4 = sld [smem:[#allocation8 + $0x100]]  ;;  %v474_v27 = vadd.f32 %v473_v18, %v462_v20  ;;  %s1659_s3 = sld [smem:[#allocation8 + $0x101]]  ;;  %v493_v32 = vstv %s1631_s13  ;;  %v497_v33 = vstv %s1633_s18  ;;  %v919_v34 = vld [vmem:[%s1617_s24 + $0x4] sm:$0x3]  ;;  %v507_v41 = vstv %s1637_s17 }
  0xa2   : > { %v456_v16 = vadd.f32 %v455_v11, %v446_v4  ;;  %s1668_s25 = sld [smem:[#allocation8 + $0x102]]  ;;  %v494_v36 = vmul.f32 %v493_v32, %v491_v19  ;;  %v498_v37 = vmul.f32 %v915_v26, %v497_v33  ;;  %v502_v38 = vstv %s1635_s23  ;;  %s1678_s26 = sld [smem:[#allocation2 + $0x180]]  ;;  %v530_v44 = vld [vmem:[%s1617_s24] sm:$0x3]  ;;  %v930_v50 = vld [vmem:[%s1617_s24 + $0x2] sm:$0x3] }
  0xa3   : > { %s1670_s9 = sld [smem:[#allocation7 + $0x2]]  ;;  %v1672_v35 = vadd.f32 %v479_v25, %v474_v27  ;;  %v503_v40 = vmul.f32 %v917_v23, %v502_v38  ;;  %v512_v42 = vstv %s1640_s0  ;;  %v516_v43 = vstv %s1642_s15  ;;  %s1685_s13 = sld [smem:[#allocation8 + $0x180]]  ;;  %v934_v55 = vld [vmem:[%s1617_s24 + $0x4] sm:$0x3]  ;;  %v573_v5 = vld [vmem:[%s1617_s24] sm:$0x3] }
  0xa4   : > { %v468_v24 = vadd.f32 %v467_v17, %v456_v16  ;;  %v489_v28 = vstv %s1629_s19  ;;  %s1676_s19 = sld [smem:[#allocation10 + $0x2]]  ;;  %s1687_s18 = sld [smem:[#allocation2 + $0x181]]  ;;  %v508_v48 = vmul.f32 %v919_v34, %v507_v41  ;;  %v513_v49 = vmul.f32 %v921_v29, %v512_v42  ;;  %v945_v11 = vld [vmem:[%s1617_s24 + $0x2] sm:$0x3]  ;;  %v949_v17 = vld [vmem:[%s1617_s24 + $0x4] sm:$0x3] }
  0xa5   : > { %v490_v31 = vmul.f32 %v489_v28, %v487_v22  ;;  %s1692_s23 = sld [smem:[#allocation8 + $0x181]]  ;;  %s1694_s17 = sld [smem:[#allocation2 + $0x182]]  ;;  %v504_v51 = vadd.f32 %v503_v40, %v494_v36  ;;  %v519_v52 = vstv %s1647_s2  ;;  %v550_v0 = vstv %s1661_s12  ;;  %v951_v26 = vld [vmem:[%s1603_s16 + $0x4] sm:$0x3] }
  0xa6   : > { %v1663_v30 = vadd.f32 %v476_v21, %v468_v24  ;;  %v532_v53 = vstv %s1649_s21  ;;  %s1700_s0 = sld [smem:[#allocation8 + $0x182]]  ;;  %s1703_s15 = scalar_lea.vmem [#allocation14], %s1611_s20  ;;  %v540_v59 = vstv %s1655_s5  ;;  %v551_v3 = vmul.f32 %v934_v55, %v550_v0 }
  0xa7   : > { %v499_v47 = vadd.f32 %v498_v37, %v490_v31  ;;  %v536_v54 = vstv %s1653_s4  ;;  %v533_v57 = vmul.f32 %v532_v53, %v530_v44  ;;  %s1708_s2 = sld [smem:[#allocation7 + $0x3]]  ;;  %v514_v61 = vadd.f32 %v513_v49, %v504_v51  ;;  %s658_s5 = sshll.u32 %s1703_s15, 4  ;;  %s1743_s5 = int_to_ptr.vmem [resolvable:$true] %s658_s5 }
  0xa8   : > { %v483_v46 = vsub.f32 %v1672_v35, %v1663_v30  ;;  %v537_v58 = vmul.f32 %v536_v54, %v534_v39  ;;  %s1710_s4 = sld [smem:[#allocation10 + $0x3]]  ;;  %v541_v62 = vmul.f32 %v930_v50, %v540_v59  ;;  %v545_v63 = vstv %s1659_s3  ;;  %s434_s16 = scalar_lea.vmem [#allocation16], %s1611_s20 }
  0xa9   : > { %v509_v56 = vadd.f32 %v508_v48, %v499_v47  ;;  %v546_v2 = vmul.f32 %v932_v45, %v545_v63  ;;  %v555_v4 = vstv %s1668_s25  ;;  %v520_v7 = vadd.f32 %v519_v52, %v514_v61  ;;  %s969_s24 = sshll.u32 %s1329_s30, 7  ;;  %s675_s21 = sshll.u32 %s434_s16, 4  ;;  %s1763_s21 = int_to_ptr.vmem [resolvable:$true] %s675_s21 }
  0xaa   : > { %484 = vst [vmem:[%s1703_s15] sm:$0x3] %v483_v46  ;;  %v542_v8 = vadd.f32 %v541_v62, %v533_v57  ;;  %v556_v9 = vmul.f32 %v936_v60, %v555_v4  ;;  %v559_v10 = vstv %s1670_s9  ;;  %v562_v14 = vstv %s1676_s19  ;;  %s1736_s9 = scalar_lea.vmem [#allocation13], %s1611_s20  ;;  %s1755_s3 = scalar_lea.hbm %s1882_s7, %s969_s24 }
  0xab   : > { %v517_v1 = vadd.f32 %v516_v43, %v509_v56  ;;  %v547_v13 = vadd.f32 %v546_v2, %v537_v58  ;;  %v575_v15 = vstv %s1678_s26  ;;  %v579_v16 = vstv %s1685_s13  ;;  %s641_s12 = sshll.u32 %s1736_s9, 4  ;;  %s621_s26 = sand.u32 1, %s1427_s11   ;;  %s1749_s12 = int_to_ptr.vmem [resolvable:$true] %s641_s12 }
  0xac   : > { %v552_v19 = vadd.f32 %v551_v3, %v542_v8  ;;  %v576_v20 = vmul.f32 %v575_v15, %v573_v5  ;;  %v580_v21 = vmul.f32 %v579_v16, %v577_v6  ;;  %v583_v23 = vstv %s1687_s18  ;;  %s1760_s19 = scalar_lea.hbm %s1881_s6, %s969_s24  ;;  %p1921_p7 = scmp.ne.s32.totalorder %s1907_s22, 0 }
  0xad   : > { %v524_v18 = vsub.f32 %v520_v7, %v517_v1  ;;  %v557_v22 = vadd.f32 %v556_v9, %v547_v13  ;;  %v588_v24 = vstv %s1692_s23  ;;  %v593_v25 = vstv %s1694_s17  ;;  %s1769_s23 = scalar_lea.hbm %s1883_s8, %s969_s24  ;;  %s1771_s17 = scalar_lea.sflag [#allocation15], %s621_s26 }
  0xae   : > { %v560_v27 = vadd.f32 %v559_v10, %v552_v19  ;;  %v584_v28 = vmul.f32 %v945_v11, %v583_v23  ;;  %v589_v29 = vmul.f32 %v947_v12, %v588_v24  ;;  %v594_v31 = vmul.f32 %v949_v17, %v593_v25 }
  0xaf   : > { %926 = vst [vmem:[%s1703_s15 + $0x2] sm:$0x3] %v524_v18  ;;  %v563_v32 = vadd.f32 %v562_v14, %v557_v22  ;;  %v598_v33 = vstv %s1700_s0  ;;  %v602_v34 = vstv %s1708_s2  ;;  %v605_v36 = vstv %s1710_s4  ;;  %s1179_s0 = scalar_lea.vmem %s1743_s5, 128  ;;  %s1346_s2 = smov [#allocation14]  }
  0xb0   : > { %v585_v37 = vadd.f32 %v584_v28, %v576_v20  ;;  %v590_v38 = vadd.f32 %v589_v29, %v580_v21  ;;  %v599_v39 = vmul.f32 %v951_v26, %v598_v33  ;;  %v481_v40 = vsub.f32 %v1663_v30, %v1672_v35  ;;  %p1180_p5 = scmp.ne.s32.totalorder %s1743_s5, %s1179_s0  ;;  %s1183_s4 = sshll.u32 %s1346_s2, 4  ;;  %s1184_s4 = int_to_ptr.vmem [resolvable:$false] %s1183_s4 }
  0xb1   : > { %v567_v41 = vsub.f32 %v563_v32, %v560_v27  ;;  %v485_v42 = vadd.f32 %v1672_v35, %v1663_v30  ;;  %v521_v43 = vsub.f32 %v517_v1, %v520_v7  ;;  %v527_v44 = vadd.f32 %v520_v7, %v517_v1  ;;  %p1186_p3 = scmp.lt.s32.totalorder %s1743_s5, %s1184_s4 }
  0xb2   : > { %v595_v45 = vadd.f32 %v594_v31, %v585_v37  ;;  %v600_v46 = vadd.f32 %v599_v39, %v590_v38  ;;  %482 = vst [vmem:[%s1736_s9] sm:$0x3] %v481_v40  ;;  %v564_v47 = vsub.f32 %v560_v27, %v563_v32  ;;  %v570_v48 = vadd.f32 %v563_v32, %v560_v27  ;;  %p1181_p1 = pnand %p1180_p5, %p1921_p7 }
  0xb3   : > { %941 = vst [vmem:[%s1703_s15 + $0x4] sm:$0x3] %v567_v41  ;;  %486 = vst [vmem:[%s434_s16] sm:$0x3] %v485_v42 }
  0xb4   : > { %925 = vst [vmem:[%s1736_s9 + $0x2] sm:$0x3] %v521_v43  ;;  %927 = vst [vmem:[%s434_s16 + $0x2] sm:$0x3] %v527_v44  ;;  %v603_v30 = vadd.f32 %v602_v34, %v595_v45  ;;  %v606_v35 = vadd.f32 %v605_v36, %v600_v46  ;;  %p1182_p2 = pneg %p1181_p1 }
  0xb5   : > { %940 = vst [vmem:[%s1736_s9 + $0x4] sm:$0x3] %v564_v47  ;;  %942 = vst [vmem:[%s434_s16 + $0x4] sm:$0x3] %v570_v48 }
  0xb6   : > { %v610_v49 = vsub.f32 %v606_v35, %v603_v30  ;;  %v607_v50 = vsub.f32 %v603_v30, %v606_v35  ;;  %v613_v51 = vadd.f32 %v606_v35, %v603_v30 }
  0xb8   : > { %956 = vst [vmem:[%s1703_s15 + $0x6] sm:$0x3] %v610_v49  ;;  %955 = vst [vmem:[%s1736_s9 + $0x6] sm:$0x3] %v607_v50  ;;  %s1185_s15 = scalar_lea.vmem %s1184_s4, 256 }
  0xb9   : > { %957 = vst [vmem:[%s434_s16 + $0x6] sm:$0x3] %v613_v51  ;;  %p1187_p13 = scmp.lt.s32.totalorder %s1185_s15, %s1179_s0 }
  0xbb   : > { %p1188_p4 = por %p1187_p13, %p1186_p3 }
  0xbd   : > { %p1189_p10 = pnand %p1188_p4, %p1182_p2 }
  0xbf   : > { %1192 = shalt.err (!%p1189_p10)
}
  0xc0   : > { %s1193_s9 = scalar_lea.hbm %s1755_s3, 128  ;;  %s1197_s24 = scalar_lea.hbm %s1882_s7, 256 }
  0xc1   : > { %p1194_p6 = scmp.ne.s32.totalorder %s1755_s3, %s1193_s9  ;;  %p1198_p9 = scmp.lt.u32.totalorder %s1755_s3, %s1882_s7 }
  0xc2   : > { %p1199_p12 = scmp.lt.u32.totalorder %s1197_s24, %s1193_s9  ;;  %p1201_p5 = scmp.lt.u32.totalorder %s1193_s9, %s1755_s3 }
  0xc3   : > { %p1195_p11 = pnand %p1194_p6, %p1921_p7 }
  0xc4   : > { %p1200_p0 = por %p1199_p12, %p1198_p9 }
  0xc5   : > { %p1196_p8 = pneg %p1195_p11 }
  0xc6   : > { %p1202_p1 = por %p1201_p5, %p1200_p0 }
  0xc8   : > { %p1203_p2 = pnand %p1202_p1, %p1196_p8 }
  0xca   : > { %1206 = shalt.err (!%p1203_p2)
}
  0xcb   : > { %s1347_s25 = smov 32   ;;  %s1348_s30 = smov 2  }
  0xcc   : > { %995 = dma.vmem_to_hbm [thread:$0]  (%p1921_p7), %s1743_s5, 128, %s1755_s3, %s1771_s17, %s1347_s25, %s1347_s25, %s1348_s30  }
  0xcd   : > { %s617_s13 = scalar_lea.sflag [#allocation4], %s1599_s1  ;;  %s1207_s18 = scalar_lea.vmem %s1749_s12, 128 }
  0xce   : > { %p1208_p3 = scmp.ne.s32.totalorder %s1749_s12, %s1207_s18  ;;  %s1349_s0 = smov [#allocation13]  }
  0xcf   : > { %s1211_s2 = sshll.u32 %s1349_s0, 4  ;;  %s1212_s2 = int_to_ptr.vmem [resolvable:$false] %s1211_s2 }
  0xd0   : > { %p1209_p13 = pnand %p1208_p3, %p1921_p7  ;;  %s1213_s4 = scalar_lea.vmem %s1212_s2, 256 }
  0xd1   : > { %p1214_p10 = scmp.lt.s32.totalorder %s1749_s12, %s1212_s2  ;;  %p1215_p6 = scmp.lt.s32.totalorder %s1213_s4, %s1207_s18 }
  0xd2   : > { %p1210_p4 = pneg %p1209_p13 }
  0xd3   : > { %p1216_p11 = por %p1215_p6, %p1214_p10 }
  0xd5   : > { %p1217_p8 = pnand %p1216_p11, %p1210_p4 }
  0xd7   : > { %1220 = shalt.err (!%p1217_p8)
}
  0xd8   : > { %s1221_s5 = scalar_lea.hbm %s1760_s19, 128  ;;  %s1225_s9 = scalar_lea.hbm %s1881_s6, 256 }
  0xd9   : > { %p1222_p9 = scmp.ne.s32.totalorder %s1760_s19, %s1221_s5  ;;  %p1226_p5 = scmp.lt.u32.totalorder %s1760_s19, %s1881_s6 }
  0xda   : > { %p1227_p1 = scmp.lt.u32.totalorder %s1225_s9, %s1221_s5  ;;  %p1229_p3 = scmp.lt.u32.totalorder %s1221_s5, %s1760_s19 }
  0xdb   : > { %p1223_p12 = pnand %p1222_p9, %p1921_p7 }
  0xdc   : > { %p1228_p2 = por %p1227_p1, %p1226_p5 }
  0xdd   : > { %p1224_p0 = pneg %p1223_p12 }
  0xde   : > { %p1230_p13 = por %p1229_p3, %p1228_p2 }
  0xe0   : > { %p1231_p4 = pnand %p1230_p13, %p1224_p0 }
  0xe2   : > { %1234 = shalt.err (!%p1231_p4)
}
  0xe3   : > { %994 = dma.vmem_to_hbm [thread:$0]  (%p1921_p7), %s1749_s12, 128, %s1760_s19, %s617_s13, %s1347_s25, %s1347_s25, %s1348_s30  }
  0xe4   : > { %s1235_s24 = scalar_lea.vmem %s1763_s21, 128  ;;  %s1350_s11 = smov [#allocation16]  }
  0xe5   : > { %p1236_p10 = scmp.ne.s32.totalorder %s1763_s21, %s1235_s24  ;;  %s1239_s20 = sshll.u32 %s1350_s11, 4  ;;  %s1240_s20 = int_to_ptr.vmem [resolvable:$false] %s1239_s20 }
  0xe6   : > { %s1241_s18 = scalar_lea.vmem %s1240_s20, 256  ;;  %p1242_p8 = scmp.lt.s32.totalorder %s1763_s21, %s1240_s20 }
  0xe7   : > { %p1237_p6 = pnand %p1236_p10, %p1921_p7  ;;  %p1243_p9 = scmp.lt.s32.totalorder %s1241_s18, %s1235_s24 }
  0xe9   : > { %p1238_p11 = pneg %p1237_p6  ;;  %p1244_p12 = por %p1243_p9, %p1242_p8 }
  0xeb   : > { %p1245_p0 = pnand %p1244_p12, %p1238_p11 }
  0xed   : > { %1248 = shalt.err (!%p1245_p0)
}
  0xee   : > { %s1249_s1 = scalar_lea.hbm %s1769_s23, 128  ;;  %s1253_s13 = scalar_lea.hbm %s1883_s8, 256 }
  0xef   : > { %p1250_p5 = scmp.ne.s32.totalorder %s1769_s23, %s1249_s1  ;;  %p1254_p3 = scmp.lt.u32.totalorder %s1769_s23, %s1883_s8 }
  0xf0   : > { %p1255_p13 = scmp.lt.u32.totalorder %s1253_s13, %s1249_s1  ;;  %p1257_p10 = scmp.lt.u32.totalorder %s1249_s1, %s1769_s23 }
  0xf1   : > { %p1251_p1 = pnand %p1250_p5, %p1921_p7 }
  0xf2   : > { %p1256_p4 = por %p1255_p13, %p1254_p3 }
  0xf3   : > { %p1252_p2 = pneg %p1251_p1 }
  0xf4   : > { %p1258_p6 = por %p1257_p10, %p1256_p4 }
  0xf6   : > { %p1259_p11 = pnand %p1258_p6, %p1252_p2 }
  0xf8   : > { %1262 = shalt.err (!%p1259_p11)
}
  0xf9   : > { %996 = dma.vmem_to_hbm [thread:$0]  (%p1921_p7), %s1763_s21, 128, %s1769_s23, %s1771_s17, %s1347_s25, %s1347_s25, %s1348_s30  }
  0xfa PF: > { %s690_s4 = sand.u32 1, %s1317_s27   ;;  %p1922_p8 = scmp.ne.s32.totalorder %s1898_s14, 0 }
  0xfb   : > { %p1923_p9 = scmp.ge.s32.totalorder %s1337_s10, 2  ;;  %s691_s5 = scalar_lea.sflag [#allocation4], %s690_s4 }
  0xfd   : > { %p1018_p12 = pnand %p1923_p9, %p1922_p8 }
  0xff   : > { %1308 = dma.done.wait (!%p1018_p12), %s691_s5, 128  }
 0x100   : > { %1310 = vsyncadd (!%p1018_p12), %s691_s5, 4294967168  ;;  %s1924_s22 = sadd.s32 4294967294, %s1337_s10  }
 0x101   : > { %s699_s3 = sand.u32 1, %s1924_s22  }
 0x102   : > { %s700_s15 = scalar_lea.sflag [#allocation15], %s699_s3 }
 0x103   : > { %1312 = dma.done.wait (!%p1018_p12), %s700_s15, 256  }
 0x104   : > { %1314 = vsyncadd (!%p1018_p12), %s700_s15, 4294967040  ;;  %s32_s10 = sadd.s32 1, %s1337_s10   ;;  %s1925_s21 = sld [smem:[#allocation26_spill]] }
 0x105   : > { %p29_p7 = scmp.ge.s32.totalorder %s32_s10, 4   ;;  %s1926_s30 = sld [smem:[#allocation24_spill]] }
 0x106   : > { %s1927_s9 = sld [smem:[#allocation25_spill]]  ;;  %s1928_s27 = smov %s1321_s28 }
 0x107   : > { %s1929_s28 = smov %s1325_s29  ;;  %31 = sbr.rel (!%p29_p7) target bundleno = 19 (0x13), region = 155 }
 0x10a   : > { %s1930_s29 = smov %s1925_s21 }
 0x10e   :  { %714 = vsyncpa [#allocation3], 1 }
 0x10f   :  { %716 = vsyncpa [#allocation3 + $0x1], 1 }
 0x110   :  { %717 = vsyncpa [#allocation4], 1 }
 0x111   :  { %719 = vsyncpa [#allocation4 + $0x1], 1 }
 0x112   :  { %720 = vsyncpa [#allocation15], 1 }
 0x113   :  { %722 = vsyncpa [#allocation15 + $0x1], 1 }
 0x114   :  { %723 = vsyncpa [#allocation5], 1 }
 0x115   :  { %725 = vsyncpa [#allocation5 + $0x1], 1 }
 0x116   :  { %726 = vsyncpa [#allocation9], 1 }
 0x117   :  { %727 = vsyncpa [#allocation6], 1 }
 0x118   :  { %729 = vsyncpa [#allocation6 + $0x1], 1 }
 0x119   :  { %730 = vsyncpa [#allocation11], 1 }

</bundles_post_ra>
